<compile_context>
chip_gen: v6e
topology: v6e:2x2x1
jax: 0.10.0
libtpu: 0.0.40
codegen_flags: <defaults>
</compile_context>

<pallas_src>
import functools

import jax
import jax.numpy as jnp
from jax.experimental import pallas as pl
from jax.experimental.pallas import tpu as pltpu

IN_F, HID_F, OUT_F = 8, 16, 4
GROUP = 32                       # samples fused per lane-dense row
XW = GROUP * IN_F                # 256  (input row width)
HW = GROUP * HID_F               # 512  (hidden row width)
OW = GROUP * OUT_F               # 128  (output row width)
P1_ROWS = XW + 8                 # 264: rows 0:256 = block-diag W1, row 256 = b1 tiled
P2_ROWS = HW + 8                 # 520: rows 0:512 = block-diag W2, row 512 = b2 tiled


def mlp_kernel(x_ref, p1_ref, p2_ref, o_ref):
    # x_ref: (TR, 256)  -- 32 samples per row, lane dense
    # p1_ref: (264, 512), p2_ref: (520, 128) -- resident packed params
    # o_ref: (TR, 128)  -- lane-dense output tile
    x = x_ref[...]
    w1 = p1_ref[0:XW, :]                        # (256, 512) block-diag W1
    b1 = p1_ref[XW:XW + 1, :]                   # (1, 512) tiled bias (broadcasts)
    w2 = p2_ref[0:HW, :]                        # (512, 128) block-diag W2
    b2 = p2_ref[HW:HW + 1, :]                   # (1, 128)

    h = jnp.dot(x, w1, preferred_element_type=jnp.float32) + b1
    h = jnp.maximum(h, 0.0)
    y = jnp.dot(h, w2, preferred_element_type=jnp.float32) + b2
    o_ref[...] = jnp.maximum(y, 0.0).astype(o_ref.dtype)


def pack_params(w1, b1, w2, b2):
    """w1: (8,16), b1: (16,), w2: (16,4), b2: (4,) -> two resident f32 slabs."""
    w1 = w1.astype(jnp.float32)
    b1 = b1.astype(jnp.float32)
    w2 = w2.astype(jnp.float32)
    b2 = b2.astype(jnp.float32)
    eye = jnp.eye(GROUP, dtype=jnp.float32)
    p1 = jnp.zeros((P1_ROWS, HW), jnp.float32)
    p1 = p1.at[0:XW, :].set(jnp.kron(eye, w1))      # (256, 512) block diagonal
    p1 = p1.at[XW, :].set(jnp.tile(b1, GROUP))      # (512,)
    p2 = jnp.zeros((P2_ROWS, OW), jnp.float32)
    p2 = p2.at[0:HW, :].set(jnp.kron(eye, w2))      # (512, 128) block diagonal
    p2 = p2.at[HW, :].set(jnp.tile(b2, GROUP))      # (128,)
    return p1, p2


@functools.partial(jax.jit, static_argnames=("tr",))
def mlp_forward(x, p1, p2, *, tr=1024):
    """x: (B, 8) f32, p1/p2: packed params -> (B, 4) f32.

    tr = row tile of the (B/32, 256) view, i.e. 32*tr samples (~1.5 MB streamed)
    per grid step at the default tr=1024.
    """
    B = x.shape[0]
    x = x.astype(jnp.float32)
    bp = pl.cdiv(B, GROUP) * GROUP
    if bp != B:
        # Only for B not a multiple of 32 (e.g. the single-vector case); the
        # main batched path is completely pad-free.
        x = jnp.pad(x, ((0, bp - B), (0, 0)))
    r = bp // GROUP
    xr = x.reshape(r, XW)                           # free contiguous reshape

    tr = min(tr, r)                                 # single step for small batches
    out = pl.pallas_call(
        mlp_kernel,
        out_shape=jax.ShapeDtypeStruct((r, OW), jnp.float32),
        grid=(pl.cdiv(r, tr),),                     # ragged last block masked by Pallas
        in_specs=[
            pl.BlockSpec((tr, XW), lambda i: (i, 0)),        # streamed x tile
            pl.BlockSpec((P1_ROWS, HW), lambda i: (0, 0)),   # resident W1/b1
            pl.BlockSpec((P2_ROWS, OW), lambda i: (0, 0)),   # resident W2/b2
        ],
        out_specs=pl.BlockSpec((tr, OW), lambda i: (i, 0)),  # lane-dense store
        compiler_params=pltpu.CompilerParams(
            dimension_semantics=("parallel",),               # megacore on v7x
        ),
    )(xr, p1, p2)

    return out.reshape(bp, OUT_F)[:B]               # free reshape; drop pad rows


def init_params(key):
    """Deterministic init mimicking nn.Linear default: U(-1/sqrt(fan_in), ...)."""
    k1, k2, k3, k4 = jax.random.split(key, 4)
    bound1 = 1.0 / jnp.sqrt(IN_F)
    bound2 = 1.0 / jnp.sqrt(HID_F)
    # PyTorch stores weight as (out, in); keep math layout (in, out) here.
    w1_pt = jax.random.uniform(k1, (HID_F, IN_F), jnp.float32, -bound1, bound1)
    b1 = jax.random.uniform(k2, (HID_F,), jnp.float32, -bound1, bound1)
    w2_pt = jax.random.uniform(k3, (OUT_F, HID_F), jnp.float32, -bound2, bound2)
    b2 = jax.random.uniform(k4, (OUT_F,), jnp.float32, -bound2, bound2)
    return w1_pt.T, b1, w2_pt.T, b2


if __name__ == "__main__":
    key = jax.random.PRNGKey(0)
    kx, kp = jax.random.split(key)

    w1, b1, w2, b2 = init_params(kp)        # math layout: w1 (8,16), w2 (16,4)
    p1, p2 = pack_params(w1, b1, w2, b2)

    def ref_fn(xx):
        return jnp.maximum(jnp.maximum(xx @ w1 + b1, 0.0) @ w2 + b2, 0.0)

    # Small batched case (single grid step, pad-free path).
    B = 512
    x = jax.random.normal(kx, (B, IN_F), jnp.float32)
    out = jax.block_until_ready(mlp_forward(x, p1, p2))
    assert out.shape == (B, OUT_F)
    assert jnp.allclose(out, ref_fn(x), atol=1e-5, rtol=1e-5)

    # Literal use case from the PyTorch script: a single 8-dim input (batch of 1).
    x1 = jax.random.normal(kx, (1, IN_F), jnp.float32)
    out1 = jax.block_until_ready(mlp_forward(x1, p1, p2))
    assert out1.shape == (1, OUT_F)
    assert jnp.allclose(out1, ref_fn(x1), atol=1e-5, rtol=1e-5)

    # Multi-step + ragged-last-block path (tiny tr just to exercise the grid).
    B2 = 1600                                 # -> r = 50 rows, grid = 4 at tr=16
    x2 = jax.random.normal(kx, (B2, IN_F), jnp.float32)
    out2 = jax.block_until_ready(mlp_forward(x2, p1, p2, tr=16))
    assert out2.shape == (B2, OUT_F)
    assert jnp.allclose(out2, ref_fn(x2), atol=1e-5, rtol=1e-5)

    print("KERNEL_OK")
</pallas_src>

<mosaic_0001>
module attributes {stable_mosaic.version = 11 : i64} {
  func.func @mlp_kernel(%arg0: i32, %arg1: memref<16x256xf32, #tpu.memory_space<vmem>>, %arg2: memref<264x512xf32, #tpu.memory_space<vmem>>, %arg3: memref<520x128xf32, #tpu.memory_space<vmem>>, %arg4: memref<16x128xf32, #tpu.memory_space<vmem>>) attributes {dimension_semantics = [#tpu.dimension_semantics<parallel>], iteration_bounds = array<i64: 1>, scalar_prefetch = 0 : i64, scratch_operands = 0 : i64, tpu.core_type = #tpu.core_type<tc>, window_params = [{transform_indices = @transform_0, window_bounds = array<i64: 16, 256>}, {pipeline_mode = #tpu.pipeline_mode<synchronous>, transform_indices = @transform_1, window_bounds = array<i64: 264, 512>}, {pipeline_mode = #tpu.pipeline_mode<synchronous>, transform_indices = @transform_2, window_bounds = array<i64: 520, 128>}, {transform_indices = @transform_3, window_bounds = array<i64: 16, 128>}]} {
    %c0 = arith.constant 0 : index
    %c0_0 = arith.constant 0 : index
    %0 = vector.load %arg1[%c0, %c0_0] : memref<16x256xf32, #tpu.memory_space<vmem>>, vector<16x256xf32>
    %c0_1 = arith.constant 0 : index
    %c0_2 = arith.constant 0 : index
    %1 = vector.load %arg2[%c0_1, %c0_2] : memref<264x512xf32, #tpu.memory_space<vmem>>, vector<256x512xf32>
    %c256 = arith.constant 256 : index
    %c0_3 = arith.constant 0 : index
    %2 = vector.load %arg2[%c256, %c0_3] : memref<264x512xf32, #tpu.memory_space<vmem>>, vector<1x512xf32>
    %c0_4 = arith.constant 0 : index
    %c0_5 = arith.constant 0 : index
    %3 = vector.load %arg3[%c0_4, %c0_5] : memref<520x128xf32, #tpu.memory_space<vmem>>, vector<512x128xf32>
    %c512 = arith.constant 512 : index
    %c0_6 = arith.constant 0 : index
    %4 = vector.load %arg3[%c512, %c0_6] : memref<520x128xf32, #tpu.memory_space<vmem>>, vector<1x128xf32>
    %cst = arith.constant dense<0.000000e+00> : vector<16x512xf32>
    %5 = tpu.matmul %0, %1, %cst {dimension_numbers = #tpu.dot_dimension_numbers<[1], [0], [0], [1], [0, 0, 1, 1], [], []>} : vector<16x256xf32>, vector<256x512xf32>, vector<16x512xf32> -> vector<16x512xf32>
    %6 = vector.broadcast %2 : vector<1x512xf32> to vector<16x512xf32>
    %7 = arith.addf %5, %6 : vector<16x512xf32>
    %cst_7 = arith.constant 0.000000e+00 : f32
    %8 = vector.broadcast %cst_7 : f32 to vector<16x512xf32>
    %9 = arith.maximumf %7, %8 : vector<16x512xf32>
    %cst_8 = arith.constant dense<0.000000e+00> : vector<16x128xf32>
    %10 = tpu.matmul %9, %3, %cst_8 {dimension_numbers = #tpu.dot_dimension_numbers<[1], [0], [0], [1], [0, 0, 1, 1], [], []>} : vector<16x512xf32>, vector<512x128xf32>, vector<16x128xf32> -> vector<16x128xf32>
    %11 = vector.broadcast %4 : vector<1x128xf32> to vector<16x128xf32>
    %12 = arith.addf %10, %11 : vector<16x128xf32>
    %cst_9 = arith.constant 0.000000e+00 : f32
    %13 = vector.broadcast %cst_9 : f32 to vector<16x128xf32>
    %14 = arith.maximumf %12, %13 : vector<16x128xf32>
    %c0_10 = arith.constant 0 : index
    %c0_11 = arith.constant 0 : index
    %15 = vector.load %arg4[%c0_10, %c0_11] : memref<16x128xf32, #tpu.memory_space<vmem>>, vector<16x128xf32>
    tpu.vector_store %arg4[%c0_10, %c0_11], %14 {strides = array<i32>} : memref<16x128xf32, #tpu.memory_space<vmem>>, vector<16x128xf32>,
    return
  }
  func.func @transform_0(%arg0: i32) -> (i32, i32) {
    %c0_i32 = arith.constant 0 : i32
    %c0_i32_0 = arith.constant 0 : i32
    return %arg0, %c0_i32 : i32, i32
  }
  func.func @transform_1(%arg0: i32) -> (i32, i32) {
    %c0_i32 = arith.constant 0 : i32
    %c0_i32_0 = arith.constant 0 : i32
    %c0_i32_1 = arith.constant 0 : i32
    return %c0_i32, %c0_i32_0 : i32, i32
  }
  func.func @transform_2(%arg0: i32) -> (i32, i32) {
    %c0_i32 = arith.constant 0 : i32
    %c0_i32_0 = arith.constant 0 : i32
    %c0_i32_1 = arith.constant 0 : i32
    return %c0_i32, %c0_i32_0 : i32, i32
  }
  func.func @transform_3(%arg0: i32) -> (i32, i32) {
    %c0_i32 = arith.constant 0 : i32
    %c0_i32_0 = arith.constant 0 : i32
    return %arg0, %c0_i32 : i32, i32
  }
}

</mosaic_0001>

<bundles_post_ra>
// kernel: mlp_forward.1
= control target key start
LH: loop header
LB: loop body
LE: loop exit
PB: predicated region body
PF: predicated region fallthrough
CT: control target
= control target key end

     0   :  { %8 = vsyncpa [#allocation3], 0  ;;  %s676_s12 = smov [#allocation2]   ;;  %s1107_s0 = inlined_call_operand.vmem [shape: f32[16,256], index: 0, kind: input, shape index: {}]   ;;  %s1108_s1 = inlined_call_operand.vmem [shape: f32[264,512], index: 1, kind: input, shape index: {}]   ;;  %s1109_s2 = inlined_call_operand.hbm [shape: f32[520,128], index: 2, kind: input, shape index: {}]   ;;  %s1110_s3 = inlined_call_operand.vmem [shape: f32[16,128], index: 3, kind: output, shape index: {}]  }
   0x1   :  { %s18_s13 = sshll.u32 %s676_s12, 4  ;;  %s19_s13 = int_to_ptr.vmem [resolvable:$true] %s18_s13 }
   0x2   :  { %s662_s14 = scalar_lea.vmem %s19_s13, 8320  ;;  %p667_p1 = scmp.lt.s32.totalorder %s19_s13, %s19_s13 }
   0x3   :  { %p663_p0 = scmp.ne.s32.totalorder %s19_s13, %s662_s14  ;;  %p668_p2 = scmp.lt.s32.totalorder %s662_s14, %s662_s14 }
   0x5   :  { %p669_p3 = por %p668_p2, %p667_p1 }
   0x7   :  { %p670_p4 = pnand %p669_p3, %p663_p0 }
   0x9   :  { %673 = shalt.err (!%p670_p4)
}
   0xa   :  { %s677_s15 = smov 128   ;;  %s678_s16 = smov 8  }
   0xb   :  { %24 = dma.hbm_to_vmem [thread:$0]  %s1109_s2, 8320, %s19_s13, [#allocation3], %s677_s15, %s677_s15, %s678_s16  }
   0xc   :  { %674 = dma.done.wait [#allocation3], 8320  }
   0xd   :  { %675 = vsyncadd [#allocation3], 4294958976  ;;  %v93_v0 = vld [vmem:[%s1108_s1 + $0x1e8] sm:$0xff]  ;;  %v95_v1 = vld [vmem:[%s1108_s1 + $0x1f8] sm:$0xff] }
   0xe   :  { %v92_v2 = vld [vmem:[%s1108_s1 + $0x1e0] sm:$0xff]  ;;  %248 = vmatprep.subr.mxu0 %v93_v0  ;;  %325 = vmatprep.subr.mxu1 %v95_v1  ;;  %v94_v3 = vld [vmem:[%s1108_s1 + $0x1f0] sm:$0xff]  ;;  %v89_v4 = vld [vmem:[%s1108_s1 + $0x1c8] sm:$0xff] }
   0xf   :  { %v91_v5 = vld [vmem:[%s1108_s1 + $0x1d8] sm:$0xff]  ;;  %249 = vmatpush1.msra.mxu0 %v92_v2  ;;  %326 = vmatpush1.msra.mxu1 %v94_v3  ;;  %v88_v6 = vld [vmem:[%s1108_s1 + $0x1c0] sm:$0xff]  ;;  %v90_v7 = vld [vmem:[%s1108_s1 + $0x1d0] sm:$0xff] }
  0x10   :  { %v85_v8 = vld [vmem:[%s1108_s1 + $0x1a8] sm:$0xff]  ;;  %250 = vmatprep.subr.mxu0 %v89_v4  ;;  %327 = vmatprep.subr.mxu1 %v91_v5  ;;  %v87_v9 = vld [vmem:[%s1108_s1 + $0x1b8] sm:$0xff]  ;;  %v84_v10 = vld [vmem:[%s1108_s1 + $0x1a0] sm:$0xff] }
  0x11   :  { %v86_v11 = vld [vmem:[%s1108_s1 + $0x1b0] sm:$0xff]  ;;  %251 = vmatpush1.msra.mxu0 %v88_v6  ;;  %328 = vmatpush1.msra.mxu1 %v90_v7  ;;  %v81_v12 = vld [vmem:[%s1108_s1 + $0x188] sm:$0xff]  ;;  %v83_v13 = vld [vmem:[%s1108_s1 + $0x198] sm:$0xff] }
  0x12   :  { %252 = vmatprep.subr.mxu0 %v85_v8  ;;  %329 = vmatprep.subr.mxu1 %v87_v9  ;;  %v80_v14 = vld [vmem:[%s1108_s1 + $0x180] sm:$0xff]  ;;  %v82_v15 = vld [vmem:[%s1108_s1 + $0x190] sm:$0xff]  ;;  %v77_v16 = vld [vmem:[%s1108_s1 + $0x168] sm:$0xff] }
  0x13   :  { %253 = vmatpush1.msra.mxu0 %v84_v10  ;;  %330 = vmatpush1.msra.mxu1 %v86_v11  ;;  %v79_v17 = vld [vmem:[%s1108_s1 + $0x178] sm:$0xff]  ;;  %v76_v18 = vld [vmem:[%s1108_s1 + $0x160] sm:$0xff]  ;;  %v78_v19 = vld [vmem:[%s1108_s1 + $0x170] sm:$0xff] }
  0x14   :  { %254 = vmatprep.subr.mxu0 %v81_v12  ;;  %331 = vmatprep.subr.mxu1 %v83_v13  ;;  %v73_v20 = vld [vmem:[%s1108_s1 + $0x148] sm:$0xff]  ;;  %v75_v21 = vld [vmem:[%s1108_s1 + $0x158] sm:$0xff]  ;;  %v72_v22 = vld [vmem:[%s1108_s1 + $0x140] sm:$0xff] }
  0x15   :  { %255 = vmatpush1.msra.mxu0 %v80_v14  ;;  %332 = vmatpush1.msra.mxu1 %v82_v15  ;;  %v74_v23 = vld [vmem:[%s1108_s1 + $0x150] sm:$0xff]  ;;  %v69_v24 = vld [vmem:[%s1108_s1 + $0x128] sm:$0xff]  ;;  %v71_v25 = vld [vmem:[%s1108_s1 + $0x138] sm:$0xff] }
  0x16   :  { %256 = vmatprep.subr.mxu0 %v77_v16  ;;  %333 = vmatprep.subr.mxu1 %v79_v17  ;;  %v68_v26 = vld [vmem:[%s1108_s1 + $0x120] sm:$0xff]  ;;  %v70_v27 = vld [vmem:[%s1108_s1 + $0x130] sm:$0xff]  ;;  %v65_v28 = vld [vmem:[%s1108_s1 + $0x108] sm:$0xff] }
  0x17   :  { %257 = vmatpush1.msra.mxu0 %v76_v18  ;;  %334 = vmatpush1.msra.mxu1 %v78_v19  ;;  %v67_v29 = vld [vmem:[%s1108_s1 + $0x118] sm:$0xff]  ;;  %v64_v30 = vld [vmem:[%s1108_s1 + $0x100] sm:$0xff]  ;;  %v66_v31 = vld [vmem:[%s1108_s1 + $0x110] sm:$0xff] }
  0x18   :  { %258 = vmatprep.subr.mxu0 %v73_v20  ;;  %335 = vmatprep.subr.mxu1 %v75_v21  ;;  %v61_v32 = vld [vmem:[%s1108_s1 + $0xe8] sm:$0xff]  ;;  %v63_v33 = vld [vmem:[%s1108_s1 + $0xf8] sm:$0xff]  ;;  %v60_v34 = vld [vmem:[%s1108_s1 + $0xe0] sm:$0xff] }
  0x19   :  { %259 = vmatpush1.msra.mxu0 %v72_v22  ;;  %336 = vmatpush1.msra.mxu1 %v74_v23  ;;  %v62_v35 = vld [vmem:[%s1108_s1 + $0xf0] sm:$0xff]  ;;  %v57_v36 = vld [vmem:[%s1108_s1 + $0xc8] sm:$0xff]  ;;  %v59_v37 = vld [vmem:[%s1108_s1 + $0xd8] sm:$0xff] }
  0x1a   :  { %260 = vmatprep.subr.mxu0 %v69_v24  ;;  %337 = vmatprep.subr.mxu1 %v71_v25  ;;  %v56_v38 = vld [vmem:[%s1108_s1 + $0xc0] sm:$0xff]  ;;  %v58_v39 = vld [vmem:[%s1108_s1 + $0xd0] sm:$0xff]  ;;  %v53_v40 = vld [vmem:[%s1108_s1 + $0xa8] sm:$0xff] }
  0x1b   :  { %261 = vmatpush1.msra.mxu0 %v68_v26  ;;  %338 = vmatpush1.msra.mxu1 %v70_v27  ;;  %v55_v41 = vld [vmem:[%s1108_s1 + $0xb8] sm:$0xff]  ;;  %v52_v42 = vld [vmem:[%s1108_s1 + $0xa0] sm:$0xff]  ;;  %v54_v43 = vld [vmem:[%s1108_s1 + $0xb0] sm:$0xff] }
  0x1c   :  { %262 = vmatprep.subr.mxu0 %v65_v28  ;;  %339 = vmatprep.subr.mxu1 %v67_v29  ;;  %v49_v44 = vld [vmem:[%s1108_s1 + $0x88] sm:$0xff]  ;;  %v51_v45 = vld [vmem:[%s1108_s1 + $0x98] sm:$0xff]  ;;  %v48_v46 = vld [vmem:[%s1108_s1 + $0x80] sm:$0xff] }
  0x1d   :  { %263 = vmatpush1.msra.mxu0 %v64_v30  ;;  %340 = vmatpush1.msra.mxu1 %v66_v31  ;;  %v50_v47 = vld [vmem:[%s1108_s1 + $0x90] sm:$0xff]  ;;  %v45_v48 = vld [vmem:[%s1108_s1 + $0x68] sm:$0xff]  ;;  %v47_v49 = vld [vmem:[%s1108_s1 + $0x78] sm:$0xff] }
  0x1e   :  { %264 = vmatprep.subr.mxu0 %v61_v32  ;;  %341 = vmatprep.subr.mxu1 %v63_v33  ;;  %v44_v50 = vld [vmem:[%s1108_s1 + $0x60] sm:$0xff]  ;;  %v46_v51 = vld [vmem:[%s1108_s1 + $0x70] sm:$0xff]  ;;  %v41_v52 = vld [vmem:[%s1108_s1 + $0x48] sm:$0xff] }
  0x1f   :  { %265 = vmatpush1.msra.mxu0 %v60_v34  ;;  %342 = vmatpush1.msra.mxu1 %v62_v35  ;;  %v43_v53 = vld [vmem:[%s1108_s1 + $0x58] sm:$0xff]  ;;  %v40_v54 = vld [vmem:[%s1108_s1 + $0x40] sm:$0xff]  ;;  %v42_v55 = vld [vmem:[%s1108_s1 + $0x50] sm:$0xff] }
  0x20   :  { %266 = vmatprep.subr.mxu0 %v57_v36  ;;  %343 = vmatprep.subr.mxu1 %v59_v37  ;;  %v37_v56 = vld [vmem:[%s1108_s1 + $0x28] sm:$0xff]  ;;  %v39_v57 = vld [vmem:[%s1108_s1 + $0x38] sm:$0xff]  ;;  %v36_v58 = vld [vmem:[%s1108_s1 + $0x20] sm:$0xff] }
  0x21   :  { %267 = vmatpush1.msra.mxu0 %v56_v38  ;;  %344 = vmatpush1.msra.mxu1 %v58_v39  ;;  %v38_v59 = vld [vmem:[%s1108_s1 + $0x30] sm:$0xff]  ;;  %v33_v60 = vld [vmem:[%s1108_s1 + $0x8] sm:$0xff]  ;;  %v35_v61 = vld [vmem:[%s1108_s1 + $0x18] sm:$0xff] }
  0x22   :  { %268 = vmatprep.subr.mxu0 %v53_v40  ;;  %345 = vmatprep.subr.mxu1 %v55_v41  ;;  %v32_v62 = vld [vmem:[%s1108_s1] sm:$0xff]  ;;  %v34_v63 = vld [vmem:[%s1108_s1 + $0x10] sm:$0xff]  ;;  %v157_v0 = vld [vmem:[%s1108_s1 + $0x3e8] sm:$0xff] }
  0x23   :  { %269 = vmatpush1.msra.mxu0 %v52_v42  ;;  %346 = vmatpush1.msra.mxu1 %v54_v43  ;;  %v159_v1 = vld [vmem:[%s1108_s1 + $0x3f8] sm:$0xff]  ;;  %v156_v2 = vld [vmem:[%s1108_s1 + $0x3e0] sm:$0xff]  ;;  %v158_v3 = vld [vmem:[%s1108_s1 + $0x3f0] sm:$0xff] }
  0x24   :  { %270 = vmatprep.subr.mxu0 %v49_v44  ;;  %347 = vmatprep.subr.mxu1 %v51_v45  ;;  %v153_v4 = vld [vmem:[%s1108_s1 + $0x3c8] sm:$0xff]  ;;  %v155_v5 = vld [vmem:[%s1108_s1 + $0x3d8] sm:$0xff]  ;;  %v152_v6 = vld [vmem:[%s1108_s1 + $0x3c0] sm:$0xff] }
  0x25   :  { %271 = vmatpush1.msra.mxu0 %v48_v46  ;;  %348 = vmatpush1.msra.mxu1 %v50_v47  ;;  %v154_v7 = vld [vmem:[%s1108_s1 + $0x3d0] sm:$0xff]  ;;  %v149_v8 = vld [vmem:[%s1108_s1 + $0x3a8] sm:$0xff]  ;;  %v151_v9 = vld [vmem:[%s1108_s1 + $0x3b8] sm:$0xff] }
  0x26   :  { %272 = vmatprep.subr.mxu0 %v45_v48  ;;  %349 = vmatprep.subr.mxu1 %v47_v49  ;;  %v148_v10 = vld [vmem:[%s1108_s1 + $0x3a0] sm:$0xff]  ;;  %v150_v11 = vld [vmem:[%s1108_s1 + $0x3b0] sm:$0xff]  ;;  %v145_v12 = vld [vmem:[%s1108_s1 + $0x388] sm:$0xff] }
  0x27   :  { %273 = vmatpush1.msra.mxu0 %v44_v50  ;;  %350 = vmatpush1.msra.mxu1 %v46_v51  ;;  %v147_v13 = vld [vmem:[%s1108_s1 + $0x398] sm:$0xff]  ;;  %v144_v14 = vld [vmem:[%s1108_s1 + $0x380] sm:$0xff]  ;;  %v146_v15 = vld [vmem:[%s1108_s1 + $0x390] sm:$0xff] }
  0x28   :  { %274 = vmatprep.subr.mxu0 %v41_v52  ;;  %351 = vmatprep.subr.mxu1 %v43_v53  ;;  %v141_v16 = vld [vmem:[%s1108_s1 + $0x368] sm:$0xff]  ;;  %v143_v17 = vld [vmem:[%s1108_s1 + $0x378] sm:$0xff]  ;;  %v140_v18 = vld [vmem:[%s1108_s1 + $0x360] sm:$0xff] }
  0x29   :  { %275 = vmatpush1.msra.mxu0 %v40_v54  ;;  %352 = vmatpush1.msra.mxu1 %v42_v55  ;;  %v142_v19 = vld [vmem:[%s1108_s1 + $0x370] sm:$0xff]  ;;  %v137_v20 = vld [vmem:[%s1108_s1 + $0x348] sm:$0xff]  ;;  %v139_v21 = vld [vmem:[%s1108_s1 + $0x358] sm:$0xff] }
  0x2a   :  { %276 = vmatprep.subr.mxu0 %v37_v56  ;;  %353 = vmatprep.subr.mxu1 %v39_v57  ;;  %v136_v22 = vld [vmem:[%s1108_s1 + $0x340] sm:$0xff]  ;;  %v138_v23 = vld [vmem:[%s1108_s1 + $0x350] sm:$0xff]  ;;  %v133_v24 = vld [vmem:[%s1108_s1 + $0x328] sm:$0xff] }
  0x2b   :  { %277 = vmatpush1.msra.mxu0 %v36_v58  ;;  %354 = vmatpush1.msra.mxu1 %v38_v59  ;;  %v135_v25 = vld [vmem:[%s1108_s1 + $0x338] sm:$0xff]  ;;  %v132_v26 = vld [vmem:[%s1108_s1 + $0x320] sm:$0xff]  ;;  %v134_v27 = vld [vmem:[%s1108_s1 + $0x330] sm:$0xff] }
  0x2c   :  { %278 = vmatprep.subr.mxu0 %v33_v60  ;;  %355 = vmatprep.subr.mxu1 %v35_v61  ;;  %v129_v28 = vld [vmem:[%s1108_s1 + $0x308] sm:$0xff]  ;;  %v131_v29 = vld [vmem:[%s1108_s1 + $0x318] sm:$0xff]  ;;  %v128_v30 = vld [vmem:[%s1108_s1 + $0x300] sm:$0xff] }
  0x2d   :  { %279 = vmatpush1.msra.mxu0 %v32_v62  ;;  %356 = vmatpush1.msra.mxu1 %v34_v63  ;;  %v130_v31 = vld [vmem:[%s1108_s1 + $0x310] sm:$0xff]  ;;  %v125_v32 = vld [vmem:[%s1108_s1 + $0x2e8] sm:$0xff]  ;;  %v127_v33 = vld [vmem:[%s1108_s1 + $0x2f8] sm:$0xff] }
  0x2e   :  { %280 = vmatprep.subr.mxu0 %v157_v0  ;;  %357 = vmatprep.subr.mxu1 %v159_v1  ;;  %v124_v34 = vld [vmem:[%s1108_s1 + $0x2e0] sm:$0xff]  ;;  %v126_v35 = vld [vmem:[%s1108_s1 + $0x2f0] sm:$0xff]  ;;  %v121_v36 = vld [vmem:[%s1108_s1 + $0x2c8] sm:$0xff] }
  0x2f   :  { %281 = vmatpush2.msra.mxu0 %v156_v2  ;;  %358 = vmatpush2.msra.mxu1 %v158_v3  ;;  %v123_v37 = vld [vmem:[%s1108_s1 + $0x2d8] sm:$0xff]  ;;  %v120_v38 = vld [vmem:[%s1108_s1 + $0x2c0] sm:$0xff]  ;;  %v122_v39 = vld [vmem:[%s1108_s1 + $0x2d0] sm:$0xff] }
  0x30   :  { %282 = vmatprep.subr.mxu0 %v153_v4  ;;  %359 = vmatprep.subr.mxu1 %v155_v5  ;;  %v117_v40 = vld [vmem:[%s1108_s1 + $0x2a8] sm:$0xff]  ;;  %v119_v41 = vld [vmem:[%s1108_s1 + $0x2b8] sm:$0xff]  ;;  %v116_v42 = vld [vmem:[%s1108_s1 + $0x2a0] sm:$0xff] }
  0x31   :  { %283 = vmatpush2.msra.mxu0 %v152_v6  ;;  %360 = vmatpush2.msra.mxu1 %v154_v7  ;;  %v118_v43 = vld [vmem:[%s1108_s1 + $0x2b0] sm:$0xff]  ;;  %v113_v44 = vld [vmem:[%s1108_s1 + $0x288] sm:$0xff]  ;;  %v115_v45 = vld [vmem:[%s1108_s1 + $0x298] sm:$0xff] }
  0x32   :  { %284 = vmatprep.subr.mxu0 %v149_v8  ;;  %361 = vmatprep.subr.mxu1 %v151_v9  ;;  %v112_v46 = vld [vmem:[%s1108_s1 + $0x280] sm:$0xff]  ;;  %v114_v47 = vld [vmem:[%s1108_s1 + $0x290] sm:$0xff]  ;;  %v109_v48 = vld [vmem:[%s1108_s1 + $0x268] sm:$0xff] }
  0x33   :  { %285 = vmatpush2.msra.mxu0 %v148_v10  ;;  %362 = vmatpush2.msra.mxu1 %v150_v11  ;;  %v111_v49 = vld [vmem:[%s1108_s1 + $0x278] sm:$0xff]  ;;  %v108_v50 = vld [vmem:[%s1108_s1 + $0x260] sm:$0xff]  ;;  %v110_v51 = vld [vmem:[%s1108_s1 + $0x270] sm:$0xff] }
  0x34   :  { %286 = vmatprep.subr.mxu0 %v145_v12  ;;  %363 = vmatprep.subr.mxu1 %v147_v13  ;;  %v105_v52 = vld [vmem:[%s1108_s1 + $0x248] sm:$0xff]  ;;  %v107_v53 = vld [vmem:[%s1108_s1 + $0x258] sm:$0xff]  ;;  %v104_v54 = vld [vmem:[%s1108_s1 + $0x240] sm:$0xff] }
  0x35   :  { %287 = vmatpush2.msra.mxu0 %v144_v14  ;;  %364 = vmatpush2.msra.mxu1 %v146_v15  ;;  %v106_v55 = vld [vmem:[%s1108_s1 + $0x250] sm:$0xff]  ;;  %v101_v56 = vld [vmem:[%s1108_s1 + $0x228] sm:$0xff]  ;;  %v103_v57 = vld [vmem:[%s1108_s1 + $0x238] sm:$0xff] }
  0x36   :  { %288 = vmatprep.subr.mxu0 %v141_v16  ;;  %365 = vmatprep.subr.mxu1 %v143_v17  ;;  %v100_v58 = vld [vmem:[%s1108_s1 + $0x220] sm:$0xff]  ;;  %v102_v59 = vld [vmem:[%s1108_s1 + $0x230] sm:$0xff]  ;;  %v97_v60 = vld [vmem:[%s1108_s1 + $0x208] sm:$0xff] }
  0x37   :  { %289 = vmatpush2.msra.mxu0 %v140_v18  ;;  %366 = vmatpush2.msra.mxu1 %v142_v19  ;;  %v99_v61 = vld [vmem:[%s1108_s1 + $0x218] sm:$0xff]  ;;  %v96_v62 = vld [vmem:[%s1108_s1 + $0x200] sm:$0xff]  ;;  %v29_v63 = vld [vmem:[%s1107_s0 + $0x8] sm:$0xff] }
  0x38   :  { %290 = vmatprep.subr.mxu0 %v137_v20  ;;  %367 = vmatprep.subr.mxu1 %v139_v21  ;;  %v98_v0 = vld [vmem:[%s1108_s1 + $0x210] sm:$0xff]  ;;  %v28_v1 = vld [vmem:[%s1107_s0] sm:$0xff]  ;;  %v31_v2 = vld [vmem:[%s1107_s0 + $0x18] sm:$0xff] }
  0x39   :  { %291 = vmatpush2.msra.mxu0 %v136_v22  ;;  %368 = vmatpush2.msra.mxu1 %v138_v23  ;;  %v193_v3 = vld [vmem:[#allocation2 + $0xf8] sm:$0xff]  ;;  %v30_v7 = vld [vmem:[%s1107_s0 + $0x10] sm:$0xff]  ;;  %v191_v12 = vld [vmem:[#allocation2 + $0xe8] sm:$0xff] }
  0x3a   :  { %292 = vmatprep.subr.mxu0 %v133_v24  ;;  %369 = vmatprep.subr.mxu1 %v135_v25  ;;  %v225_v4 = vld [vmem:[#allocation2 + $0x1f8] sm:$0xff]  ;;  %v192_v8 = vld [vmem:[#allocation2 + $0xf0] sm:$0xff]  ;;  %v223_v13 = vld [vmem:[#allocation2 + $0x1e8] sm:$0xff] }
  0x3b   :  { %293 = vmatpush2.msra.mxu0 %v132_v26  ;;  %370 = vmatpush2.msra.mxu1 %v134_v27  ;;  %v177_v5 = vld [vmem:[#allocation2 + $0x78] sm:$0xff]  ;;  %v224_v9 = vld [vmem:[#allocation2 + $0x1f0] sm:$0xff]  ;;  %v175_v14 = vld [vmem:[#allocation2 + $0x68] sm:$0xff] }
  0x3c   :  { %294 = vmatprep.subr.mxu0 %v129_v28  ;;  %371 = vmatprep.subr.mxu1 %v131_v29  ;;  %v209_v6 = vld [vmem:[#allocation2 + $0x178] sm:$0xff]  ;;  %v176_v10 = vld [vmem:[#allocation2 + $0x70] sm:$0xff]  ;;  %v207_v15 = vld [vmem:[#allocation2 + $0x168] sm:$0xff] }
  0x3d   :  { %295 = vmatpush2.msra.mxu0 %v128_v30  ;;  %372 = vmatpush2.msra.mxu1 %v130_v31  ;;  %v208_v11 = vld [vmem:[#allocation2 + $0x170] sm:$0xff]  ;;  %v190_v16 = vld [vmem:[#allocation2 + $0xe0] sm:$0xff]  ;;  %v189_v20 = vld [vmem:[#allocation2 + $0xd8] sm:$0xff] }
  0x3e   :  { %296 = vmatprep.subr.mxu0 %v125_v32  ;;  %373 = vmatprep.subr.mxu1 %v127_v33  ;;  %v222_v17 = vld [vmem:[#allocation2 + $0x1e0] sm:$0xff]  ;;  %v221_v21 = vld [vmem:[#allocation2 + $0x1d8] sm:$0xff]  ;;  %v188_v24 = vld [vmem:[#allocation2 + $0xd0] sm:$0xff] }
  0x3f   :  { %297 = vmatpush2.msra.mxu0 %v124_v34  ;;  %374 = vmatpush2.msra.mxu1 %v126_v35  ;;  %v174_v18 = vld [vmem:[#allocation2 + $0x60] sm:$0xff]  ;;  %v173_v22 = vld [vmem:[#allocation2 + $0x58] sm:$0xff]  ;;  %v220_v25 = vld [vmem:[#allocation2 + $0x1d0] sm:$0xff] }
  0x40   :  { %298 = vmatprep.subr.mxu0 %v121_v36  ;;  %375 = vmatprep.subr.mxu1 %v123_v37  ;;  %v206_v19 = vld [vmem:[#allocation2 + $0x160] sm:$0xff]  ;;  %v205_v23 = vld [vmem:[#allocation2 + $0x158] sm:$0xff]  ;;  %v172_v26 = vld [vmem:[#allocation2 + $0x50] sm:$0xff] }
  0x41   :  { %299 = vmatpush2.msra.mxu0 %v120_v38  ;;  %376 = vmatpush2.msra.mxu1 %v122_v39  ;;  %v204_v27 = vld [vmem:[#allocation2 + $0x150] sm:$0xff]  ;;  %v187_v28 = vld [vmem:[#allocation2 + $0xc8] sm:$0xff]  ;;  %v186_v32 = vld [vmem:[#allocation2 + $0xc0] sm:$0xff] }
  0x42   :  { %300 = vmatprep.subr.mxu0 %v117_v40  ;;  %377 = vmatprep.subr.mxu1 %v119_v41  ;;  %v219_v29 = vld [vmem:[#allocation2 + $0x1c8] sm:$0xff]  ;;  %v218_v33 = vld [vmem:[#allocation2 + $0x1c0] sm:$0xff]  ;;  %v185_v36 = vld [vmem:[#allocation2 + $0xb8] sm:$0xff] }
  0x43   :  { %301 = vmatpush2.msra.mxu0 %v116_v42  ;;  %378 = vmatpush2.msra.mxu1 %v118_v43  ;;  %v171_v30 = vld [vmem:[#allocation2 + $0x48] sm:$0xff]  ;;  %v170_v34 = vld [vmem:[#allocation2 + $0x40] sm:$0xff]  ;;  %v217_v37 = vld [vmem:[#allocation2 + $0x1b8] sm:$0xff] }
  0x44   :  { %302 = vmatprep.subr.mxu0 %v113_v44  ;;  %379 = vmatprep.subr.mxu1 %v115_v45  ;;  %v203_v31 = vld [vmem:[#allocation2 + $0x148] sm:$0xff]  ;;  %v202_v35 = vld [vmem:[#allocation2 + $0x140] sm:$0xff]  ;;  %v169_v38 = vld [vmem:[#allocation2 + $0x38] sm:$0xff] }
  0x45   :  { %303 = vmatpush2.msra.mxu0 %v112_v46  ;;  %380 = vmatpush2.msra.mxu1 %v114_v47  ;;  %v201_v39 = vld [vmem:[#allocation2 + $0x138] sm:$0xff]  ;;  %v184_v40 = vld [vmem:[#allocation2 + $0xb0] sm:$0xff]  ;;  %v183_v44 = vld [vmem:[#allocation2 + $0xa8] sm:$0xff] }
  0x46   :  { %304 = vmatprep.subr.mxu0 %v109_v48  ;;  %381 = vmatprep.subr.mxu1 %v111_v49  ;;  %v216_v41 = vld [vmem:[#allocation2 + $0x1b0] sm:$0xff]  ;;  %v215_v45 = vld [vmem:[#allocation2 + $0x1a8] sm:$0xff]  ;;  %v182_v48 = vld [vmem:[#allocation2 + $0xa0] sm:$0xff] }
  0x47   :  { %305 = vmatpush2.msra.mxu0 %v108_v50  ;;  %382 = vmatpush2.msra.mxu1 %v110_v51  ;;  %v168_v42 = vld [vmem:[#allocation2 + $0x30] sm:$0xff]  ;;  %v167_v46 = vld [vmem:[#allocation2 + $0x28] sm:$0xff]  ;;  %v214_v49 = vld [vmem:[#allocation2 + $0x1a0] sm:$0xff] }
  0x48   :  { %306 = vmatprep.subr.mxu0 %v105_v52  ;;  %383 = vmatprep.subr.mxu1 %v107_v53  ;;  %v200_v43 = vld [vmem:[#allocation2 + $0x130] sm:$0xff]  ;;  %v199_v47 = vld [vmem:[#allocation2 + $0x128] sm:$0xff]  ;;  %v166_v50 = vld [vmem:[#allocation2 + $0x20] sm:$0xff] }
  0x49   :  { %307 = vmatpush2.msra.mxu0 %v104_v54  ;;  %384 = vmatpush2.msra.mxu1 %v106_v55  ;;  %v198_v51 = vld [vmem:[#allocation2 + $0x120] sm:$0xff]  ;;  %v181_v52 = vld [vmem:[#allocation2 + $0x98] sm:$0xff] }
  0x4a   :  { %308 = vmatprep.subr.mxu0 %v101_v56  ;;  %385 = vmatprep.subr.mxu1 %v103_v57  ;;  %v213_v53 = vld [vmem:[#allocation2 + $0x198] sm:$0xff]  ;;  %v180_v56 = vld [vmem:[#allocation2 + $0x90] sm:$0xff] }
  0x4b   :  { %309 = vmatpush2.msra.mxu0 %v100_v58  ;;  %386 = vmatpush2.msra.mxu1 %v102_v59  ;;  %v165_v54 = vld [vmem:[#allocation2 + $0x18] sm:$0xff]  ;;  %v212_v57 = vld [vmem:[#allocation2 + $0x190] sm:$0xff] }
  0x4c   :  { %310 = vmatprep.subr.mxu0 %v97_v60  ;;  %387 = vmatprep.subr.mxu1 %v99_v61  ;;  %v197_v55 = vld [vmem:[#allocation2 + $0x118] sm:$0xff]  ;;  %v164_v58 = vld [vmem:[#allocation2 + $0x10] sm:$0xff]  ;;  %v179_v60 = vld [vmem:[#allocation2 + $0x88] sm:$0xff] }
  0x4d   :  { %311 = vmatpush2.msra.mxu0 %v96_v62  ;;  %312 = vmatprep.mubr.f32.mxu0 %v29_v63  ;;  %v196_v59 = vld [vmem:[#allocation2 + $0x110] sm:$0xff]  ;;  %v211_v61 = vld [vmem:[#allocation2 + $0x188] sm:$0xff] }
  0x4e   :  { %388 = vmatpush2.msra.mxu1 %v98_v0  ;;  %389 = vmatprep.mubr.f32.mxu1 %v29_v63  ;;  %v163_v62 = vld [vmem:[#allocation2 + $0x8] sm:$0xff]  ;;  %v178_v0 = vld [vmem:[#allocation2 + $0x80] sm:$0xff] }
  0x4f   :  { %313 = vmatmul.mubr.f32.vlgmr.msra.gmra.mxu0 %v28_v1  ;;  %390 = vmatmul.mubr.f32.vlgmr.msra.gmra.mxu1 %v28_v1  ;;  %v195_v63 = vld [vmem:[#allocation2 + $0x108] sm:$0xff]  ;;  %v210_v1 = vld [vmem:[#allocation2 + $0x180] sm:$0xff] }
  0x50   :  { %318 = vmatprep.mubr.f32.mxu0 %v31_v2  ;;  %395 = vmatprep.mubr.f32.mxu1 %v31_v2  ;;  %v162_v2 = vld [vmem:[#allocation2] sm:$0xff] }
  0x51   :  { %575 = vmatprep.subr.mxu0 %v193_v3  ;;  %613 = vmatprep.subr.mxu1 %v225_v4  ;;  %v194_v3 = vld [vmem:[#allocation2 + $0x100] sm:$0xff]  ;;  %v228_v4 = vlaneseq }
  0x52   :  { %576 = vmatpush3.msra.mxu0 %v177_v5  ;;  %614 = vmatpush3.msra.mxu1 %v209_v6 }
  0x53   :  { %319 = vmatmul.mubr.f32.gmra.mxu0 %v30_v7  ;;  %396 = vmatmul.mubr.f32.gmra.mxu1 %v30_v7  ;;  %v229_v5 = vshrl.u32 %v228_v4, 7 }
  0x54   :  { %577 = vmatprep.subr.mxu0 %v192_v8  ;;  %615 = vmatprep.subr.mxu1 %v224_v9  ;;  %v573_v8 = vld [vmem:[%s1108_s1 + $0x400] ss:$8 sm:$0xf] }
  0x55   :  { %578 = vmatpush3.msra.mxu0 %v176_v10  ;;  %616 = vmatpush3.msra.mxu1 %v208_v11  ;;  %v238_v6 = vsub.s32 2, %v229_v5  ;;  %v230_v7 = vsub.s32 0, %v229_v5  ;;  %v234_v9 = vsub.s32 1, %v229_v5  ;;  %v242_v10 = vsub.s32 3, %v229_v5 }
  0x56   :  { %579 = vmatprep.subr.mxu0 %v191_v12  ;;  %617 = vmatprep.subr.mxu1 %v223_v13 }
  0x57   :  { %580 = vmatpush3.msra.mxu0 %v175_v14  ;;  %618 = vmatpush3.msra.mxu1 %v207_v15  ;;  %v239_v11 = vrot.slane %v573_v8, %v238_v6  ;;  %v231_v12 = vrot.slane %v573_v8, %v230_v7  ;;  %v235_v13 = vrot.slane %v573_v8, %v234_v9 }
  0x58   :  { %581 = vmatprep.subr.mxu0 %v190_v16  ;;  %619 = vmatprep.subr.mxu1 %v222_v17  ;;  %v243_v14 = vrot.slane %v573_v8, %v242_v10 }
  0x59   :  { %582 = vmatpush3.msra.mxu0 %v174_v18  ;;  %620 = vmatpush3.msra.mxu1 %v206_v19 }
  0x5a   :  { %583 = vmatprep.subr.mxu0 %v189_v20  ;;  %621 = vmatprep.subr.mxu1 %v221_v21 }
  0x5b   :  { %584 = vmatpush3.msra.mxu0 %v173_v22  ;;  %622 = vmatpush3.msra.mxu1 %v205_v23 }
  0x5c   :  { %585 = vmatprep.subr.mxu0 %v188_v24  ;;  %623 = vmatprep.subr.mxu1 %v220_v25 }
  0x5d   :  { %586 = vmatpush3.msra.mxu0 %v172_v26  ;;  %624 = vmatpush3.msra.mxu1 %v204_v27 }
  0x5e   :  { %587 = vmatprep.subr.mxu0 %v187_v28  ;;  %625 = vmatprep.subr.mxu1 %v219_v29 }
  0x5f   :  { %588 = vmatpush3.msra.mxu0 %v171_v30  ;;  %626 = vmatpush3.msra.mxu1 %v203_v31 }
  0x60   :  { %589 = vmatprep.subr.mxu0 %v186_v32  ;;  %627 = vmatprep.subr.mxu1 %v218_v33 }
  0x61   :  { %590 = vmatpush3.msra.mxu0 %v170_v34  ;;  %628 = vmatpush3.msra.mxu1 %v202_v35 }
  0x62   :  { %591 = vmatprep.subr.mxu0 %v185_v36  ;;  %629 = vmatprep.subr.mxu1 %v217_v37 }
  0x63   :  { %592 = vmatpush3.msra.mxu0 %v169_v38  ;;  %630 = vmatpush3.msra.mxu1 %v201_v39 }
  0x64   :  { %593 = vmatprep.subr.mxu0 %v184_v40  ;;  %631 = vmatprep.subr.mxu1 %v216_v41  ;;  %v574_v41 = vld [vmem:[#allocation2 + $0x200] ss:$0 sm:$0xff] }
  0x65   :  { %594 = vmatpush3.msra.mxu0 %v168_v42  ;;  %632 = vmatpush3.msra.mxu1 %v200_v43 }
  0x66   :  { %595 = vmatprep.subr.mxu0 %v183_v44  ;;  %633 = vmatprep.subr.mxu1 %v215_v45 }
  0x67   :  { %596 = vmatpush3.msra.mxu0 %v167_v46  ;;  %634 = vmatpush3.msra.mxu1 %v199_v47 }
  0x68   :  { %597 = vmatprep.subr.mxu0 %v182_v48  ;;  %635 = vmatprep.subr.mxu1 %v214_v49 }
  0x69   :  { %598 = vmatpush3.msra.mxu0 %v166_v50  ;;  %636 = vmatpush3.msra.mxu1 %v198_v51 }
  0x6a   :  { %599 = vmatprep.subr.mxu0 %v181_v52  ;;  %637 = vmatprep.subr.mxu1 %v213_v53 }
  0x6b   :  { %600 = vmatpush3.msra.mxu0 %v165_v54  ;;  %638 = vmatpush3.msra.mxu1 %v197_v55 }
  0x6c   :  { %601 = vmatprep.subr.mxu0 %v180_v56  ;;  %639 = vmatprep.subr.mxu1 %v212_v57 }
  0x6d   :  { %602 = vmatpush3.msra.mxu0 %v164_v58  ;;  %640 = vmatpush3.msra.mxu1 %v196_v59 }
  0x6e   :  { %603 = vmatprep.subr.mxu0 %v179_v60  ;;  %641 = vmatprep.subr.mxu1 %v211_v61 }
  0x6f   :  { %604 = vmatpush3.msra.mxu0 %v163_v62  ;;  %642 = vmatpush3.msra.mxu1 %v195_v63 }
  0x70   :  { %605 = vmatprep.subr.mxu0 %v178_v0  ;;  %643 = vmatprep.subr.mxu1 %v210_v1 }
  0x71   :  { %606 = vmatpush3.msra.mxu0 %v162_v2  ;;  %644 = vmatpush3.msra.mxu1 %v194_v3 }
 0x10f   :  { %v314_v15 = vpop.f32.mrf.mxu0  ;;  %v391_v16 = vpop.f32.mrf.mxu1 }
 0x110   :  { %v392_v17 = vadd.f32 %v391_v16, %v239_v11  ;;  %v315_v18 = vadd.f32 %v314_v15, %v231_v12 }
 0x111   :  { %v316_v19 = vpop.f32.mrf.mxu0  ;;  %v393_v20 = vpop.f32.mrf.mxu1 }
 0x112   :  { %v317_v21 = vadd.f32 %v316_v19, %v235_v13  ;;  %v394_v22 = vadd.f32 %v393_v20, %v243_v14  ;;  %v404_v23 = vmax.f32 %v392_v17, 0.0  ;;  %v402_v29 = vmax.f32 %v315_v18, 0.0 }
 0x113   :  { %v320_v24 = vpop.f32.mrf.mxu0  ;;  %v397_v25 = vpop.f32.mrf.mxu1 }
 0x114   :  { %v403_v26 = vmax.f32 %v317_v21, 0.0  ;;  %v405_v27 = vmax.f32 %v394_v22, 0.0  ;;  %v398_v28 = vadd.f32 %v397_v25, %v239_v11  ;;  %v321_v30 = vadd.f32 %v320_v24, %v231_v12 }
 0x115   :  { %v322_v31 = vpop.f32.mrf.mxu0  ;;  %v399_v32 = vpop.f32.mrf.mxu1 }
 0x116   :  { %v323_v33 = vadd.f32 %v322_v31, %v235_v13  ;;  %v400_v34 = vadd.f32 %v399_v32, %v243_v14  ;;  %478 = vmatprep.mubr.f32.mxu0 %v403_v26  ;;  %553 = vmatprep.mubr.f32.mxu1 %v405_v27  ;;  %v408_v35 = vmax.f32 %v398_v28, 0.0  ;;  %v406_v38 = vmax.f32 %v321_v30, 0.0 }
 0x117   :  { %479 = vmatmul.mubr.f32.vlgmr.msra.gmra.mxu0 %v402_v29  ;;  %554 = vmatmul.mubr.f32.vlgmr.msra.gmra.mxu1 %v404_v23 }
 0x118   :  { %v407_v36 = vmax.f32 %v323_v33, 0.0  ;;  %v409_v37 = vmax.f32 %v400_v34, 0.0 }
 0x11a   :  { %483 = vmatprep.mubr.f32.mxu0 %v407_v36  ;;  %558 = vmatprep.mubr.f32.mxu1 %v409_v37 }
 0x11b   :  { %484 = vmatmul.mubr.f32.gmra.mxu0 %v406_v38  ;;  %559 = vmatmul.mubr.f32.gmra.mxu1 %v408_v35 }
 0x1d7   :  { %v607_v39 = vpop.f32.mrf.mxu0  ;;  %v645_v40 = vpop.f32.mrf.mxu1 }
 0x1d9   :  { %v608_v42 = vpop.f32.mrf.mxu0  ;;  %v646_v43 = vpop.f32.mrf.mxu1 }
 0x1da   :  { %v609_v44 = vadd.f32 %v608_v42, %v607_v39  ;;  %v647_v48 = vadd.f32 %v646_v43, %v645_v40 }
 0x1db   :  { %v610_v45 = vpop.f32.mrf.mxu0  ;;  %v648_v46 = vpop.f32.mrf.mxu1 }
 0x1dc   :  { %v481_v47 = vadd.f32 %v609_v44, %v574_v41 }
 0x1dd   :  { %v611_v49 = vpop.f32.mrf.mxu0  ;;  %v649_v50 = vpop.f32.mrf.mxu1 }
 0x1de   :  { %v556_v51 = vadd.f32 %v647_v48, %v481_v47  ;;  %v612_v52 = vadd.f32 %v611_v49, %v610_v45  ;;  %v650_v55 = vadd.f32 %v649_v50, %v648_v46 }
 0x1e0   :  { %v564_v53 = vmax.f32 %v556_v51, 0.0  ;;  %v486_v54 = vadd.f32 %v612_v52, %v574_v41 }
 0x1e2   :  { %566 = vst [vmem:[%s1110_s3] sm:$0xff] %v564_v53  ;;  %v561_v56 = vadd.f32 %v650_v55, %v486_v54 }
 0x1e4   :  { %v565_v57 = vmax.f32 %v561_v56, 0.0 }
 0x1e6   :  { %567 = vst [vmem:[%s1110_s3 + $0x8] sm:$0xff] %v565_v57 }
 0x1e7   :  { %572 = vsyncpa [#allocation3], 1 }

</bundles_post_ra>
